<compile_context>
chip_gen: v7x
topology: tpu7x:2x2x1
jax: 0.10.0
libtpu: 0.0.40
codegen_flags: <defaults>
</compile_context>

<pallas_src>
import functools

import jax
import jax.numpy as jnp
from jax.experimental import pallas as pl
from jax.experimental.pallas import tpu as pltpu

LANES = 128
SUBLANES = 8
SUB_TILE = SUBLANES * LANES          # 1024 elements
TARGET_TILE_BYTES = 4 * 1024 * 1024  # ~4 MiB per input per grid step
VMEM_LIMIT_BYTES = 32 * 1024 * 1024


def _charbonnier_partial_kernel(x_ref, y_ref, o_ref, *, eps_sq, needs_mask,
                                last_valid_rows):
    # Load in native dtype, compute in f32.
    x = x_ref[...].astype(jnp.float32)
    y = y_ref[...].astype(jnp.float32)
    diff = x - y
    val = jnp.sqrt(diff * diff + jnp.float32(eps_sq))

    def partial_sum(v):
        # (block_rows, 128) -> (8, 128): a pure stream of VPU vreg adds, no
        # cross-lane XLU work in the hot loop.
        # TODO(synk): confirm via pl.lower_as_mlir / bundle dump that `v`
        # fuses into this reduction and is not materialized as a full-tile
        # VMEM temp (reshape is (8,128)-tile aligned, so fusion is expected).
        return jnp.sum(v.reshape(-1, SUBLANES, LANES), axis=0)

    if not needs_mask:
        o_ref[...] = partial_sum(val)
    else:
        last = pl.num_programs(0) - 1

        @pl.when(pl.program_id(0) != last)
        def _():
            o_ref[...] = partial_sum(val)

        @pl.when(pl.program_id(0) == last)
        def _():
            # Only the last grid step can overrun the valid rows; lanes are
            # always fully valid because the kernel only ever sees a
            # 1024-aligned prefix, so a row-index compare suffices.
            row = jax.lax.broadcasted_iota(jnp.int32, val.shape, 0)
            masked = jnp.where(row < jnp.int32(last_valid_rows), val,
                               jnp.float32(0.0))
            o_ref[...] = partial_sum(masked)


def charbonnier_loss(x, y, eps=1e-3, loss_weight=1.0):
    """Matches CharbonnierLoss.forward: mean(sqrt((x - y)^2 + eps^2)).

    NOTE: like the PyTorch reference, ``loss_weight`` is accepted but NOT
    applied (the reference forward() ignores it).
    """
    assert x.shape == y.shape
    del loss_weight  # reference forward() ignores it
    n_total = int(x.size)
    eps_sq = float(eps) * float(eps)

    xf = jnp.ravel(x)  # layout-preserving; keep native dtype in HBM
    yf = jnp.ravel(y)

    # 1024-aligned prefix handled by the Pallas kernel; the <1024-element
    # ragged tail (if any) is reduced in plain JAX.  No full-array jnp.pad.
    n_tail = n_total % SUB_TILE
    n_main = n_total - n_tail

    total = jnp.float32(0.0)

    if n_main:
        rows = n_main // LANES  # multiple of 8
        itemsize = int(jnp.dtype(x.dtype).itemsize)
        # Size the tile in bytes so per-step overhead amortization and VMEM
        # use are consistent across dtypes / generations.
        rows_per_tile = max(
            SUBLANES,
            (TARGET_TILE_BYTES // (LANES * itemsize)) // SUBLANES * SUBLANES)

        if rows <= rows_per_tile:
            # Small input: still use >= 2 grid steps when possible so both
            # v7x TensorCores stream HBM (grid axis is "parallel").
            half = pl.cdiv(rows, 2)
            block_rows = max(SUBLANES, pl.cdiv(half, SUBLANES) * SUBLANES)
        else:
            block_rows = rows_per_tile

        num_blocks = pl.cdiv(rows, block_rows)
        needs_mask = (num_blocks * block_rows) != rows
        last_valid_rows = rows - (num_blocks - 1) * block_rows

        if n_tail:
            x2d = xf[:n_main].reshape(rows, LANES)
            y2d = yf[:n_main].reshape(rows, LANES)
        else:
            x2d = xf.reshape(rows, LANES)
            y2d = yf.reshape(rows, LANES)

        kernel = functools.partial(
            _charbonnier_partial_kernel,
            eps_sq=eps_sq,
            needs_mask=bool(needs_mask),
            last_valid_rows=int(last_valid_rows),
        )

        out_bytes = num_blocks * SUBLANES * LANES * 4
        cost = pl.CostEstimate(
            flops=3 * n_main,
            transcendentals=n_main,
            bytes_accessed=2 * n_main * itemsize + out_bytes,
        )

        partials = pl.pallas_call(
            kernel,
            out_shape=jax.ShapeDtypeStruct((num_blocks * SUBLANES, LANES),
                                           jnp.float32),
            grid_spec=pltpu.PrefetchScalarGridSpec(
                num_scalar_prefetch=0,
                grid=(num_blocks,),
                in_specs=[
                    pl.BlockSpec((block_rows, LANES), lambda i: (i, 0)),
                    pl.BlockSpec((block_rows, LANES), lambda i: (i, 0)),
                ],
                out_specs=pl.BlockSpec((SUBLANES, LANES), lambda i: (i, 0)),
            ),
            compiler_params=pltpu.CompilerParams(
                dimension_semantics=("parallel",),
                vmem_limit_bytes=VMEM_LIMIT_BYTES,
            ),
            cost_estimate=cost,
        )(x2d, y2d)

        # Tiny final reduction (num_blocks * 8 * 128 floats) in plain JAX.
        total = total + jnp.sum(partials)

    if n_tail:
        xt = xf[n_main:].astype(jnp.float32)
        yt = yf[n_main:].astype(jnp.float32)
        dt = xt - yt
        total = total + jnp.sum(jnp.sqrt(dt * dt + jnp.float32(eps_sq)))

    return (total / jnp.float32(n_total)).astype(jnp.float32)


if __name__ == "__main__":
    key = jax.random.PRNGKey(0)
    kx, ky = jax.random.split(key)
    # NCHW, matching the PyTorch module's typical image inputs
    x = jax.random.normal(kx, (2, 4, 16, 16), dtype=jnp.float32)
    y = jax.random.normal(ky, (2, 4, 16, 16), dtype=jnp.float32)

    loss_fn = jax.jit(lambda a, b: charbonnier_loss(a, b, eps=1e-3))
    loss = jax.block_until_ready(loss_fn(x, y))

    # Reference check (plain JAX).
    diff = x - y
    ref = jnp.mean(jnp.sqrt(diff * diff + jnp.float32(1e-3 * 1e-3)))
    assert jnp.allclose(loss, ref, rtol=1e-5, atol=1e-6), (loss, ref)

    print("KERNEL_OK")
</pallas_src>

<mosaic_0001>
module attributes {stable_mosaic.version = 11 : i64} {
  func.func @_charbonnier_partial_kernel(%arg0: i32, %arg1: memref<8x128xf32, #tpu.memory_space<vmem>>, %arg2: memref<8x128xf32, #tpu.memory_space<vmem>>, %arg3: memref<8x128xf32, #tpu.memory_space<vmem>>) attributes {dimension_semantics = [#tpu.dimension_semantics<parallel>], iteration_bounds = array<i64: 2>, scalar_prefetch = 0 : i64, scratch_operands = 0 : i64, tpu.core_type = #tpu.core_type<tc>, window_params = [{transform_indices = @transform_0, window_bounds = array<i64: 8, 128>}, {transform_indices = @transform_1, window_bounds = array<i64: 8, 128>}, {transform_indices = @transform_2, window_bounds = array<i64: 8, 128>}]} {
    %c0 = arith.constant 0 : index
    %c0_0 = arith.constant 0 : index
    %0 = vector.load %arg1[%c0, %c0_0] : memref<8x128xf32, #tpu.memory_space<vmem>>, vector<8x128xf32>
    %c0_1 = arith.constant 0 : index
    %c0_2 = arith.constant 0 : index
    %1 = vector.load %arg2[%c0_1, %c0_2] : memref<8x128xf32, #tpu.memory_space<vmem>>, vector<8x128xf32>
    %2 = arith.subf %0, %1 : vector<8x128xf32>
    %3 = arith.mulf %2, %2 : vector<8x128xf32>
    %cst = arith.constant 9.99999997E-7 : f32
    %4 = vector.broadcast %cst : f32 to vector<8x128xf32>
    %5 = arith.addf %3, %4 : vector<8x128xf32>
    %6 = math.sqrt %5 : vector<8x128xf32>
    %7 = vector.shape_cast %6 : vector<8x128xf32> to vector<1x8x128xf32>
    %cst_3 = arith.constant dense<0.000000e+00> : vector<8x128xf32>
    %8 = vector.multi_reduction <add>, %7, %cst_3 [0] : vector<1x8x128xf32> to vector<8x128xf32>
    %c0_4 = arith.constant 0 : index
    %c0_5 = arith.constant 0 : index
    %9 = vector.load %arg3[%c0_4, %c0_5] : memref<8x128xf32, #tpu.memory_space<vmem>>, vector<8x128xf32>
    tpu.vector_store %arg3[%c0_4, %c0_5], %8 {strides = array<i32>} : memref<8x128xf32, #tpu.memory_space<vmem>>, vector<8x128xf32>,
    return
  }
  func.func @transform_0(%arg0: i32) -> (i32, i32) {
    %c0_i32 = arith.constant 0 : i32
    %c0_i32_0 = arith.constant 0 : i32
    return %arg0, %c0_i32 : i32, i32
  }
  func.func @transform_1(%arg0: i32) -> (i32, i32) {
    %c0_i32 = arith.constant 0 : i32
    %c0_i32_0 = arith.constant 0 : i32
    return %arg0, %c0_i32 : i32, i32
  }
  func.func @transform_2(%arg0: i32) -> (i32, i32) {
    %c0_i32 = arith.constant 0 : i32
    %c0_i32_0 = arith.constant 0 : i32
    return %arg0, %c0_i32 : i32, i32
  }
}

</mosaic_0001>

<bundles_post_ra>
// kernel: _lambda_.1
= control target key start
LH: loop header
LB: loop body
LE: loop exit
PB: predicated region body
PF: predicated region fallthrough
CT: control target
= control target key end

     0   :  { %s278_s9 = smov 0   ;;  %s298_s0 = inlined_call_operand.vmem [shape: f32[16,128], index: 0, kind: input, shape index: {}]   ;;  %s299_s1 = inlined_call_operand.vmem [shape: f32[16,128], index: 1, kind: input, shape index: {}]   ;;  %s300_s2 = inlined_call_operand.vmem [shape: f32[16,128], index: 2, kind: output, shape index: {}]  }
   0x1 LB: > { %s235_s10 = sadd.s32 4294967295, %s261_s9   ;;  %p239_p0 = scmp.ge.s32.totalorder %s261_s9, 1  ;;  %s261_s9 = sphi %s278_s9, %s12_s9  }
   0x2   : > { %p120_p1 = scmp.lt.s32.totalorder %s261_s9, 3 }
   0x4   : > { %p121_p2 = pnand %p239_p0, %p120_p1 }
   0x5   : > { %p144_p3 = scmp.lt.s32.totalorder (!%p121_p2), %s235_s10, 1 }
   0x6   : > { %124 = sbr.rel (%p121_p2) target bundleno = 40 (0x28), region = 28 }
   0xd   : > { %s302_s10 = smov (!%p144_p3, %s235_s10), 1 }
   0xe   : > { %s240_s11 = sshll.u32 %s302_s10, 3 }
   0xf   : > { %s147_s14 = scalar_lea.vmem %s298_s0, %s240_s11  ;;  %s151_s17 = scalar_lea.vmem %s299_s1, %s240_s11 }
  0x10   : > { %v156_v0 = vld [vmem:[%s147_s14] sm:$0xff]  ;;  %s155_s20 = scalar_lea.vmem %s300_s2, %s240_s11 }
  0x11   : > { %v157_v1 = vld [vmem:[%s151_s17] sm:$0xff] }
  0x12   : > { %v158_v2 = vsub.f32 %v156_v0, %v157_v1 }
  0x14   : > { %v159_v3 = vmul.f32 %v158_v2, %v158_v2 }
  0x16   : > { %v160_v4 = vadd.f32 1e-06, %v159_v3 }
  0x18   : > { %253 = vrsqrt.f32 %v160_v4  ;;  %vm163_vm0 = vcmp.eq.f32.partialorder %v160_v4, inf  ;;  %v166_v6 = vand.u32 2147483648, %v160_v4  ;;  %vm165_vm1 = vcmp.eq.f32.partialorder %v160_v4, 0.0 }
  0x22   : > { %v254_v5 = vpop.eup %253 }
  0x23   : > { %v162_v7 = vmul.f32 %v254_v5, %v160_v4 }
  0x25   : > { %v164_v8 = vsel %vm163_vm0, %v160_v4, %v162_v7 }
  0x26   : > { %v167_v9 = vsel %vm165_vm1, %v166_v6, %v164_v8 }
  0x27   : > { %169 = vst [vmem:[%s155_s20] sm:$0xff] %v167_v9 }
  0x28 PF: > { %s12_s9 = sadd.s32 1, %s261_s9  }
  0x29   : > { %p9_p4 = scmp.ge.s32.totalorder %s12_s9, 4  }
  0x2b   :  { %11 = sbr.rel (!%p9_p4) target bundleno = 1 (0x1), region = 61 }

</bundles_post_ra>
